<compile_context>
chip_gen: v7x
topology: tpu7x:2x2x1
jax: 0.10.0
libtpu: 0.0.40
codegen_flags: <defaults>
</compile_context>

<pallas_src>
import jax
import jax.numpy as jnp
import numpy as np
from jax.experimental import pallas as pl
from jax.experimental.pallas import tpu as pltpu


def _transform_kernel(c_ref, wc_ref, bc_ref, edge_ref, mask_ref, stack_ref, ptr_ref,
                      out_ref):
    # ---- query = map_c(c_i): one batched MXU matmul (B,H)x(H,E) ----
    query = jnp.dot(c_ref[...], wc_ref[...],
                    preferred_element_type=jnp.float32) + bc_ref[...]        # (B, E)

    # ---- edge weights: sigmoid(<query, feat_edge>_E) * mask ----
    # E stays on the lane axis; broadcast-multiply on the VPU, lane reduce on the XLU.
    # exp() goes to the EUP slot (otherwise idle); mask cast is free VPU filler.
    edge = edge_ref[...]                                                     # (B, N, N, E)
    s = jnp.sum(edge * query[:, None, None, :], axis=-1)                     # (B, N, N)
    weit = (1.0 / (1.0 + jnp.exp(-s))) * mask_ref[...].astype(jnp.float32)   # (B, N, N)

    # ---- read attention from the stack at the current pointer ----
    ptr = ptr_ref[...]                                                       # (B, L)
    p = ptr[:, None, None, :]                                                # (B, 1, 1, L)
    stack = stack_ref[...]                                                   # (B, N, G, L)
    att_in = jnp.sum(stack * p, axis=-1)                                     # (B, N, G)

    # ---- transfer along edges: att_out[b,j,g] = sum_i att_in[b,i,g] * weit[b,i,j] ----
    # One tiny batched MXU dot_general; weit keeps its (i=sublane, j=lane) layout.
    att_out = jnp.einsum('big,bij->bjg', att_in, weit,
                         preferred_element_type=jnp.float32)                 # (B, N, G)

    # ---- normalize by per-(batch, glimpse) max over objects, clamped at 1 ----
    norm = jnp.max(att_out, axis=1, keepdims=True)                           # (B, 1, G)
    norm = jnp.where(norm <= 1.0, 1.0, norm)
    att_out = att_out / norm                                                 # exact divide

    # ---- write back at the (unchanged) pointer: convex blend (soft-pointer safe) ----
    out_ref[...] = att_out[:, :, :, None] * p + stack * (1.0 - p)            # (B, N, G, L)


def transform_module(vision_feat, feat, feat_edge, c_i, relation_mask,
                     att_stack, stack_ptr, mem_in, params):
    """Pallas implementation of TransformModule.forward.

    vision_feat / feat are accepted for signature fidelity but (like in the PyTorch
    module) are not used.  params = (W_c^T of shape (H,E), b_c of shape (E,)).
    relation_mask may be any dtype; it is cast to float32 inside the kernel.
    """
    del vision_feat, feat  # unused by the original forward
    wc, bc = params
    B, N, _, E = feat_edge.shape
    H = c_i.shape[1]
    G, L = att_stack.shape[2], att_stack.shape[3]

    vmem_spec = pl.BlockSpec(memory_space=pltpu.MemorySpace.VMEM)

    att_stack_out = pl.pallas_call(
        _transform_kernel,
        out_shape=jax.ShapeDtypeStruct((B, N, G, L), jnp.float32),
        in_specs=[vmem_spec] * 7,          # full-array blocks, no grid, no pipeline
        out_specs=vmem_spec,
    )(c_i, wc, bc.reshape(1, E), feat_edge, relation_mask, att_stack, stack_ptr)

    # stack_ptr is returned unchanged; mem is zeroed (mem_in.clone().zero_())
    return att_stack_out, stack_ptr, jnp.zeros_like(mem_in)


def transform_module_ref(feat_edge, c_i, relation_mask, att_stack, stack_ptr, mem_in, params):
    """Pure-JAX reference mirroring the PyTorch forward."""
    wc, bc = params
    query = c_i @ wc + bc                                             # (B, E)
    elt_prod = query[:, None, None, :] * feat_edge                    # (B, N, N, E)
    s = jnp.sum(elt_prod, axis=3)
    weit = (1.0 / (1.0 + jnp.exp(-s))) * relation_mask.astype(jnp.float32)
    p = stack_ptr[:, None, None, :]                                   # (B, 1, 1, L)
    att_in = jnp.sum(att_stack * p, axis=-1)                          # (B, N, G)
    att_in_t = jnp.transpose(att_in, (0, 2, 1))                       # (B, G, N)
    att_out = jnp.transpose(jnp.matmul(att_in_t, weit), (0, 2, 1))    # (B, N, G)
    norm = jnp.max(att_out, axis=1, keepdims=True)
    norm = jnp.where(norm <= 1.0, 1.0, norm)
    att_out = att_out / norm
    att_stack_new = att_out[..., None] * p + att_stack * (1.0 - p)
    return att_stack_new, stack_ptr, jnp.zeros_like(mem_in)


if __name__ == "__main__":
    # small shapes: B=2 batch, N=8 objects, E=16 edge dim, H=32 hidden,
    # G=2 glimpses, L=4 stack slots, M=16 mem dim
    B, N, E, H, G, L, M = 2, 8, 16, 32, 2, 4, 16

    key = jax.random.PRNGKey(0)
    ks = jax.random.split(key, 10)

    # nn.Linear-like deterministic init (weights stored transposed for right-matmul)
    wc = jax.random.uniform(ks[0], (H, E), jnp.float32, -1.0 / np.sqrt(H), 1.0 / np.sqrt(H))
    bc = jax.random.uniform(ks[1], (E,), jnp.float32, -1.0 / np.sqrt(H), 1.0 / np.sqrt(H))
    params = (wc, bc)

    # inputs (relation_mask kept in its native integer dtype; cast happens in-kernel)
    c_i = jax.random.normal(ks[2], (B, H), jnp.float32)
    feat_edge = jax.random.normal(ks[3], (B, N, N, E), jnp.float32)
    relation_mask = (jax.random.uniform(ks[4], (B, N, N)) > 0.3).astype(jnp.int32)
    att_stack = jax.random.uniform(ks[5], (B, N, G, L), jnp.float32)
    stack_ptr = jnp.zeros((B, L), jnp.float32).at[:, 1].set(1.0)   # one-hot pointer
    mem_in = jax.random.normal(ks[6], (B, M), jnp.float32)
    vision_feat = jax.random.normal(ks[7], (B, N, E), jnp.float32)  # unused by forward
    feat = jax.random.normal(ks[8], (B, N, E), jnp.float32)         # unused by forward

    out_stack, out_ptr, out_mem = transform_module(
        vision_feat, feat, feat_edge, c_i, relation_mask, att_stack, stack_ptr, mem_in, params)
    jax.block_until_ready((out_stack, out_ptr, out_mem))

    ref_stack, ref_ptr, ref_mem = transform_module_ref(
        feat_edge, c_i, relation_mask, att_stack, stack_ptr, mem_in, params)

    np.testing.assert_allclose(np.asarray(out_stack), np.asarray(ref_stack), atol=1e-4, rtol=1e-4)
    np.testing.assert_allclose(np.asarray(out_ptr), np.asarray(ref_ptr), atol=0, rtol=0)
    np.testing.assert_allclose(np.asarray(out_mem), np.asarray(ref_mem), atol=0, rtol=0)

    print("KERNEL_OK")
</pallas_src>

<mosaic_0001>
module attributes {stable_mosaic.version = 11 : i64} {
  func.func @_transform_kernel(%arg0: memref<2x32xf32, #tpu.memory_space<vmem>>, %arg1: memref<32x16xf32, #tpu.memory_space<vmem>>, %arg2: memref<1x16xf32, #tpu.memory_space<vmem>>, %arg3: memref<2x8x8x16xf32, #tpu.memory_space<vmem>>, %arg4: memref<2x8x8xi32, #tpu.memory_space<vmem>>, %arg5: memref<2x8x2x4xf32, #tpu.memory_space<vmem>>, %arg6: memref<2x4xf32, #tpu.memory_space<vmem>>, %arg7: memref<2x8x2x4xf32, #tpu.memory_space<vmem>>) attributes {dimension_semantics = [], scalar_prefetch = 0 : i64, scratch_operands = 0 : i64, tpu.core_type = #tpu.core_type<tc>} {
    %c0 = arith.constant 0 : index
    %c0_0 = arith.constant 0 : index
    %0 = vector.load %arg0[%c0, %c0_0] : memref<2x32xf32, #tpu.memory_space<vmem>>, vector<2x32xf32>
    %c0_1 = arith.constant 0 : index
    %c0_2 = arith.constant 0 : index
    %1 = vector.load %arg1[%c0_1, %c0_2] : memref<32x16xf32, #tpu.memory_space<vmem>>, vector<32x16xf32>
    %cst = arith.constant dense<0.000000e+00> : vector<2x16xf32>
    %2 = tpu.matmul %0, %1, %cst {dimension_numbers = #tpu.dot_dimension_numbers<[1], [0], [0], [1], [0, 0, 1, 1], [], []>} : vector<2x32xf32>, vector<32x16xf32>, vector<2x16xf32> -> vector<2x16xf32>
    %c0_3 = arith.constant 0 : index
    %c0_4 = arith.constant 0 : index
    %3 = vector.load %arg2[%c0_3, %c0_4] : memref<1x16xf32, #tpu.memory_space<vmem>>, vector<1x16xf32>
    %4 = vector.broadcast %3 : vector<1x16xf32> to vector<2x16xf32>
    %5 = arith.addf %2, %4 : vector<2x16xf32>
    %c0_5 = arith.constant 0 : index
    %c0_6 = arith.constant 0 : index
    %c0_7 = arith.constant 0 : index
    %c0_8 = arith.constant 0 : index
    %6 = vector.load %arg3[%c0_5, %c0_6, %c0_7, %c0_8] : memref<2x8x8x16xf32, #tpu.memory_space<vmem>>, vector<2x8x8x16xf32>
    %7 = vector.shape_cast %5 : vector<2x16xf32> to vector<2x1x1x16xf32>
    %8 = vector.broadcast %7 : vector<2x1x1x16xf32> to vector<2x8x8x16xf32>
    %9 = arith.mulf %6, %8 : vector<2x8x8x16xf32>
    %cst_9 = arith.constant dense<0.000000e+00> : vector<2x8x8xf32>
    %10 = vector.multi_reduction <add>, %9, %cst_9 [3] : vector<2x8x8x16xf32> to vector<2x8x8xf32>
    %cst_10 = arith.constant 0.000000e+00 : f32
    %11 = vector.broadcast %cst_10 : f32 to vector<2x8x8xf32>
    %12 = arith.subf %11, %10 : vector<2x8x8xf32>
    %13 = math.exp %12 : vector<2x8x8xf32>
    %cst_11 = arith.constant 1.000000e+00 : f32
    %14 = vector.broadcast %cst_11 : f32 to vector<2x8x8xf32>
    %15 = arith.addf %14, %13 : vector<2x8x8xf32>
    %cst_12 = arith.constant 1.000000e+00 : f32
    %16 = vector.broadcast %cst_12 : f32 to vector<2x8x8xf32>
    %17 = arith.divf %16, %15 : vector<2x8x8xf32>
    %c0_13 = arith.constant 0 : index
    %c0_14 = arith.constant 0 : index
    %c0_15 = arith.constant 0 : index
    %18 = vector.load %arg4[%c0_13, %c0_14, %c0_15] : memref<2x8x8xi32, #tpu.memory_space<vmem>>, vector<2x8x8xi32>
    %19 = arith.sitofp %18 : vector<2x8x8xi32> to vector<2x8x8xf32>
    %20 = arith.mulf %17, %19 : vector<2x8x8xf32>
    %c0_16 = arith.constant 0 : index
    %c0_17 = arith.constant 0 : index
    %21 = vector.load %arg6[%c0_16, %c0_17] : memref<2x4xf32, #tpu.memory_space<vmem>>, vector<2x4xf32>
    %22 = vector.shape_cast %21 : vector<2x4xf32> to vector<2x1x1x4xf32>
    %c0_18 = arith.constant 0 : index
    %c0_19 = arith.constant 0 : index
    %c0_20 = arith.constant 0 : index
    %c0_21 = arith.constant 0 : index
    %23 = vector.load %arg5[%c0_18, %c0_19, %c0_20, %c0_21] : memref<2x8x2x4xf32, #tpu.memory_space<vmem>>, vector<2x8x2x4xf32>
    %24 = vector.broadcast %22 : vector<2x1x1x4xf32> to vector<2x8x2x4xf32>
    %25 = arith.mulf %23, %24 : vector<2x8x2x4xf32>
    %cst_22 = arith.constant dense<0.000000e+00> : vector<2x8x2xf32>
    %26 = vector.multi_reduction <add>, %25, %cst_22 [3] : vector<2x8x2x4xf32> to vector<2x8x2xf32>
    "tpu.trace_start"() <{level = 10 : i32, message = "big,bij->bjg"}> : () -> ()
    %cst_23 = arith.constant dense<0.000000e+00> : vector<2x8x2xf32>
    %27 = tpu.matmul %20, %26, %cst_23 {dimension_numbers = #tpu.dot_dimension_numbers<[1], [1], [2], [2], [0, 0, 0, 2, 1, 2], [0], [0]>} : vector<2x8x8xf32>, vector<2x8x2xf32>, vector<2x8x2xf32> -> vector<2x8x2xf32>
    "tpu.trace_stop"() : () -> ()
    %cst_24 = arith.constant dense<0xFF800000> : vector<2x2xf32>
    %28 = vector.multi_reduction <maximumf>, %27, %cst_24 [1] : vector<2x8x2xf32> to vector<2x2xf32>
    %29 = vector.shape_cast %28 : vector<2x2xf32> to vector<2x1x2xf32>
    %cst_25 = arith.constant 1.000000e+00 : f32
    %30 = vector.broadcast %cst_25 : f32 to vector<2x1x2xf32>
    %31 = arith.cmpf ole, %29, %30 : vector<2x1x2xf32>
    %cst_26 = arith.constant 1.000000e+00 : f32
    %32 = vector.broadcast %cst_26 : f32 to vector<2x1x2xf32>
    %33 = arith.select %31, %32, %29 : vector<2x1x2xi1>, vector<2x1x2xf32>
    %34 = vector.broadcast %33 : vector<2x1x2xf32> to vector<2x8x2xf32>
    %35 = arith.divf %27, %34 : vector<2x8x2xf32>
    %36 = vector.shape_cast %35 : vector<2x8x2xf32> to vector<2x8x2x1xf32>
    %37 = vector.broadcast %36 : vector<2x8x2x1xf32> to vector<2x8x2x4xf32>
    %38 = vector.broadcast %22 : vector<2x1x1x4xf32> to vector<2x8x2x4xf32>
    %39 = arith.mulf %37, %38 : vector<2x8x2x4xf32>
    %cst_27 = arith.constant 1.000000e+00 : f32
    %40 = vector.broadcast %cst_27 : f32 to vector<2x1x1x4xf32>
    %41 = arith.subf %40, %22 : vector<2x1x1x4xf32>
    %42 = vector.broadcast %41 : vector<2x1x1x4xf32> to vector<2x8x2x4xf32>
    %43 = arith.mulf %23, %42 : vector<2x8x2x4xf32>
    %44 = arith.addf %39, %43 : vector<2x8x2x4xf32>
    %c0_28 = arith.constant 0 : index
    %c0_29 = arith.constant 0 : index
    %c0_30 = arith.constant 0 : index
    %c0_31 = arith.constant 0 : index
    %45 = vector.load %arg7[%c0_28, %c0_29, %c0_30, %c0_31] : memref<2x8x2x4xf32, #tpu.memory_space<vmem>>, vector<2x8x2x4xf32>
    tpu.vector_store %arg7[%c0_28, %c0_29, %c0_30, %c0_31], %44 {strides = array<i32>} : memref<2x8x2x4xf32, #tpu.memory_space<vmem>>, vector<2x8x2x4xf32>,
    return
  }
}

</mosaic_0001>

<bundles_post_ra>
// kernel: tpu_custom_call.1
= control target key start
LH: loop header
LB: loop body
LE: loop exit
PB: predicated region body
PF: predicated region fallthrough
CT: control target
= control target key end

     0   :  { %12 = vsyncpa [#allocation3], 0  ;;  %s1424_s24 = smov [#allocation2]   ;;  %s1963_s0 = inlined_call_operand.vmem [shape: f32[2,32], index: 0, kind: input, shape index: {}]   ;;  %s1964_s1 = inlined_call_operand.vmem [shape: f32[32,16], index: 1, kind: input, shape index: {}]   ;;  %s1965_s2 = inlined_call_operand.vmem [shape: f32[1,16], index: 2, kind: input, shape index: {}]   ;;  %s1966_s3 = inlined_call_operand.hbm [shape: f32[2,8,8,16], index: 3, kind: input, shape index: {}]   ;;  %s1967_s4 = inlined_call_operand.vmem [shape: s32[2,8,8], index: 4, kind: input, shape index: {}]   ;;  %s1968_s5 = inlined_call_operand.vmem [shape: f32[2,8,2,4], index: 5, kind: input, shape index: {}]   ;;  %s1969_s6 = inlined_call_operand.vmem [shape: f32[2,4], index: 6, kind: input, shape index: {}]   ;;  %s1970_s7 = inlined_call_operand.vmem [shape: f32[2,8,2,4], index: 7, kind: output, shape index: {}]  }
   0x1   :  { %s24_s25 = sshll.u32 %s1424_s24, 4  ;;  %s1400_s28 = scalar_lea.hbm %s1966_s3, 2048  ;;  %s25_s25 = int_to_ptr.vmem [resolvable:$true] %s24_s25 }
   0x2   :  { %p1401_p0 = scmp.ne.s32.totalorder %s1966_s3, %s1400_s28  ;;  %p1404_p1 = scmp.lt.u32.totalorder %s1400_s28, %s1966_s3 }
   0x4   :  { %p1406_p2 = pnand %p1404_p1, %p1401_p0 }
   0x6   :  { %1409 = shalt.err (!%p1406_p2)
}
   0x7   :  { %s1410_s10 = scalar_lea.vmem %s25_s25, 2048  ;;  %p1415_p4 = scmp.lt.s32.totalorder %s25_s25, %s25_s25 }
   0x8   :  { %p1411_p3 = scmp.ne.s32.totalorder %s25_s25, %s1410_s10  ;;  %p1416_p5 = scmp.lt.s32.totalorder %s1410_s10, %s1410_s10 }
   0xa   :  { %p1417_p6 = por %p1416_p5, %p1415_p4 }
   0xc   :  { %p1418_p7 = pnand %p1417_p6, %p1411_p3 }
   0xe   :  { %1421 = shalt.err (!%p1418_p7)
}
   0xf   :  { %s1425_s11 = smov 128   ;;  %s1426_s12 = smov 8  }
  0x10   :  { %30 = dma.hbm_to_vmem [thread:$0]  %s1966_s3, 2048, %s25_s25, [#allocation3], %s1425_s11, %s1425_s11, %s1426_s12  }
  0x11   :  { %1422 = dma.done.wait [#allocation3], 2048  }
  0x12   :  { %1423 = vsyncadd [#allocation3], 4294965248  ;;  %v1427_v0 = vmov 0.0|0.0   ;;  %vm1428_vm0 = vmmov 0   ;;  %v1429_v1 = vmov 0.0   ;;  %v146_v2 = vlaneseq  ;;  %v41_v4 = vld [vmem:[%s1964_s1] sm:$0xff] }
  0x13   :  { %1316 = vmatprep.subr.bf16.mxu0 %v1427_v0  ;;  %1303 = vmatprep.mubr.msk.f32.mxu0 %vm1428_vm0, %v1429_v1  ;;  %v42_v5 = vld [vmem:[%s1964_s1 + $0x8] sm:$0xff]  ;;  %v43_v6 = vld [vmem:[%s1964_s1 + $0x10] sm:$0xff]  ;;  %v44_v10 = vld [vmem:[%s1964_s1 + $0x18] sm:$0xff]  ;;  %vm52_vm1 = vcmask 261120   ;;  %v1430_v38 = vmov 1966171168  }
  0x14   :  { %1306 = vmatprep.subr.mxu1 %v1429_v1  ;;  %1308 = vmatprep.mubr.msk.f32.mxu1 %vm1428_vm0, %v1429_v1  ;;  %v1490_v3 = vshrl.u32 %v146_v2, 7  ;;  %v1317_v9 = vpack.c.bf16 %v42_v5, %v41_v4  ;;  %v336_v11 = vld [vmem:[%s1967_s4] sm:$0xff]  ;;  %v1320_v14 = vpack.c.bf16 %v44_v10, %v43_v6  ;;  %v337_v18 = vld [vmem:[%s1967_s4 + $0x8] sm:$0xff]  ;;  %v144_v39 = vunpack.c.l.s4 %v1430_v38  ;;  %v128_v49 = vld [vmem:[#allocation2 + $0x10] sm:$0xff] }
  0x15   :  { %v338_v12 = vcvt.s32.f32 %v336_v11  ;;  %v40_v21 = vld [vmem:[%s1963_s0] sm:$0x3]  ;;  %v1532_v23 = vcvt.s32.f32 %v337_v18  ;;  %vm191_vm2 = vcmask 130048   ;;  %v129_v52 = vld [vmem:[#allocation2 + $0x18] sm:$0xff]  ;;  %v127_v53 = vld [vmem:[#allocation2 + $0x8] sm:$0xff]  ;;  %vm554_vm3 = vcmask 25600  }
  0x16   :  { %v1502_v7 = vsub.s32 1, %v1490_v3  ;;  %v1505_v8 = vsub.s32 0, %v1490_v3  ;;  %v1514_v13 = vsub.s32 2, %v1490_v3  ;;  %1318 = vmatpush3.bf16.msra.mxu0 %v1317_v9  ;;  %v1517_v15 = vsub.s32 4, %v1490_v3  ;;  %v1281_v41 = vld [vmem:[%s1965_s2] ss:$0 sm:$0xff] }
  0x17   :  { %1319 = vmatprep.subr.bf16.mxu0 %v1427_v0  ;;  %v1526_v20 = vsub.s32 3, %v1490_v3  ;;  %v1536_v25 = vsub.s32 5, %v1490_v3  ;;  %v1541_v27 = vsub.s32 6, %v1490_v3  ;;  %v1546_v30 = vsub.s32 7, %v1490_v3  ;;  %v126_v50 = vld [vmem:[#allocation2] sm:$0xff]  ;;  %v131_v61 = vld [vmem:[#allocation2 + $0x28] sm:$0xff] }
  0x18   :  { %v352_v16 = vrot.slane %v338_v12, %v1502_v7  ;;  %v345_v17 = vrot.slane %v338_v12, %v1505_v8  ;;  %v359_v19 = vrot.slane %v338_v12, %v1514_v13  ;;  %v373_v22 = vrot.slane %v338_v12, %v1517_v15  ;;  %v130_v62 = vld [vmem:[#allocation2 + $0x20] sm:$0xff]  ;;  %v132_v9 = vld [vmem:[#allocation2 + $0x30] sm:$0xff]  ;;  %v135_v10 = vld [vmem:[#allocation2 + $0x48] sm:$0xff] }
  0x19   :  { %v366_v24 = vrot.slane %v338_v12, %v1526_v20  ;;  %v401_v26 = vrot.slane %v1532_v23, %v1505_v8  ;;  %v380_v28 = vrot.slane %v338_v12, %v1536_v25  ;;  %v387_v29 = vrot.slane %v338_v12, %v1541_v27  ;;  %v136_v18 = vld [vmem:[#allocation2 + $0x50] sm:$0xff] }
  0x1a   :  { %354 = vbcast.lane.b32.xlu1 %v352_v16, 256  ;;  %347 = vbcast.lane.b32.xlu0 %v345_v17, 256  ;;  %v408_v31 = vrot.slane %v1532_v23, %v1502_v7  ;;  %v394_v32 = vrot.slane %v338_v12, %v1546_v30  ;;  %v415_v33 = vrot.slane %v1532_v23, %v1514_v13  ;;  %v145_v40 = vunpack.c.0.s8 %v144_v39  ;;  %v133_v17 = vld [vmem:[#allocation2 + $0x38] sm:$0xff] }
  0x1b   :  { %1321 = vmatpush3.bf16.msra.mxu0 %v1320_v14  ;;  %v429_v34 = vrot.slane %v1532_v23, %v1517_v15  ;;  %v422_v35 = vrot.slane %v1532_v23, %v1526_v20  ;;  %v443_v36 = vrot.slane %v1532_v23, %v1541_v27  ;;  %v436_v37 = vrot.slane %v1532_v23, %v1536_v25 }
  0x1c   :  { %v1565_v42 = vsub.s32 %v145_v40, %v1490_v3  ;;  %vm669_vm4 = vcmask 1041409   ;;  %vm671_vm5 = vcmask 1042434   ;;  %vm673_vm6 = vcmask 1043459  }
  0x1d   :  { %vm675_vm7 = vcmask 1044484   ;;  %vm677_vm8 = vcmask 1045509   ;;  %vm679_vm9 = vcmask 1046534   ;;  %vm681_vm10 = vcmask 1047559  }
  0x1e   :  { %1304 = vmatmul.mubr.msk.f32.vlgmr.msra.gmra.mrb[0].mxu0 %vm52_vm1, %v40_v21  ;;  %361 = vbcast.lane.b32.xlu1 %v359_v19, 256  ;;  %vm764_vm11 = vcmask 64512   ;;  %vm1063_vm12 = vcmask 15360  }
  0x1f   :  { %375 = vbcast.lane.b32.xlu0 %v373_v22, 256 }
  0x22   :  { %368 = vbcast.lane.b32.xlu1 %v366_v24, 256 }
  0x23   :  { %403 = vbcast.lane.b32.xlu0 %v401_v26, 256  ;;  %v137_v26 = vld [vmem:[#allocation2 + $0x58] sm:$0xff] }
  0x26   :  { %382 = vbcast.lane.b32.xlu1 %v380_v28, 256  ;;  %v134_v28 = vld [vmem:[#allocation2 + $0x40] sm:$0xff] }
  0x27   :  { %389 = vbcast.lane.b32.xlu0 %v387_v29, 256  ;;  %v1283_v29 = vld.sshfl [vmem:[%s1969_s6] sm:$0x11 pattern:$0x75316420] }
  0x2a   :  { %410 = vbcast.lane.b32.xlu1 %v408_v31, 256 }
  0x2b   :  { %396 = vbcast.lane.b32.xlu0 %v394_v32, 256 }
  0x2e   :  { %417 = vbcast.lane.b32.xlu1 %v415_v33, 256 }
  0x2f   :  { %431 = vbcast.lane.b32.xlu0 %v429_v34, 256 }
  0x32   :  { %424 = vbcast.lane.b32.xlu1 %v422_v35, 256  ;;  %v139_v35 = vld [vmem:[#allocation2 + $0x68] sm:$0xff] }
  0x33   :  { %445 = vbcast.lane.b32.xlu0 %v443_v36, 256  ;;  %v138_v36 = vld [vmem:[#allocation2 + $0x60] sm:$0xff] }
  0x36   :  { %438 = vbcast.lane.b32.xlu1 %v436_v37, 256  ;;  %v1586_v37 = vrot.slane %v1283_v29, %v1565_v42 }
  0xf1   :  { %v122_v43 = vpop.f32.mrb[0].mxu0 }
  0xf2   :  { %v123_v44 = vadd.f32 %v1281_v41, %v122_v43  ;;  %v1305_v45 = vpop.f32.mrb[1].mxu0  ;;  %v141_v43 = vld [vmem:[#allocation2 + $0x78] sm:$0xff] }
  0xf3   :  { %v1592_v45 = vrot.slane %v1586_v37, %v1505_v8 }
  0xf4   :  { %v149_v46 = vrot.slane %v123_v44, %v1565_v42  ;;  %v140_v44 = vld [vmem:[#allocation2 + $0x70] sm:$0xff] }
  0xf6   :  { %v157_v47 = vrot.slane %v149_v46, %v1565_v42  ;;  %v150_v48 = vcombine.high %v149_v46, %v149_v46  ;;  %v1597_v46 = vld [vmem:[%s1968_s5 + $0x2] sm:$0x3] }
  0xf8   :  { %v168_v51 = vrot.slane %v157_v47, %v1505_v8  ;;  %v164_v56 = vrot.slane %v150_v48, %v1565_v42 }
  0xfa   :  { %v177_v54 = vmul.f32 %v168_v51, %v128_v49  ;;  %v175_v55 = vmul.f32 %v168_v51, %v126_v50  ;;  %v178_v59 = vmul.f32 %v168_v51, %v129_v52  ;;  %v176_v60 = vmul.f32 %v168_v51, %v127_v53  ;;  %v1606_v52 = vld [vmem:[%s1968_s5 + $0x4] sm:$0x3] }
  0xfb   :  { %v172_v63 = vrot.slane %v164_v56, %v1505_v8  ;;  %v180_v5 = vmul.f32 %v168_v51, %v131_v61  ;;  %v179_v6 = vmul.f32 %v168_v51, %v130_v62  ;;  %v181_v14 = vmul.f32 %v168_v51, %v132_v9  ;;  %v1624_v61 = vld [vmem:[%s1968_s5 + $0xa] sm:$0x3] }
  0xfc   :  { %v198_v57 = vsel %vm191_vm2, %v177_v54, 0.0  ;;  %v192_v58 = vsel %vm191_vm2, %v175_v55, 0.0  ;;  %v201_v0 = vsel %vm191_vm2, %v178_v59, 0.0  ;;  %v195_v4 = vsel %vm191_vm2, %v176_v60, 0.0 }
  0xfd   :  { %199 = vadd.xlane.f32.xlu1 %v198_v57  ;;  %193 = vadd.xlane.f32.xlu0 %v192_v58  ;;  %v207_v11 = vsel %vm191_vm2, %v180_v5, 0.0  ;;  %v204_v12 = vsel %vm191_vm2, %v179_v6, 0.0  ;;  %v184_v16 = vmul.f32 %v172_v63, %v135_v10  ;;  %v210_v19 = vsel %vm191_vm2, %v181_v14, 0.0  ;;  %v1616_v57 = vld [vmem:[%s1968_s5 + $0x6] sm:$0x3] }
  0xfe   :  { %v182_v22 = vmul.f32 %v168_v51, %v133_v17  ;;  %v185_v24 = vmul.f32 %v172_v63, %v136_v18  ;;  %v186_v33 = vmul.f32 %v172_v63, %v137_v26  ;;  %v183_v34 = vmul.f32 %v172_v63, %v134_v28  ;;  %v1649_v10 = vld [vmem:[%s1968_s5 + $0x14] sm:$0x3]  ;;  %v1665_v18 = vld [vmem:[%s1968_s5 + $0x1a] sm:$0x3]  ;;  %v1681_v28 = vld [vmem:[%s1968_s5 + $0x8] sm:$0x3] }
  0xff   :  { %v219_v21 = vsel %vm191_vm2, %v184_v16, 0.0  ;;  %v188_v40 = vmul.f32 %v172_v63, %v139_v35  ;;  %v187_v41 = vmul.f32 %v172_v63, %v138_v36  ;;  %v190_v49 = vmul.f32 %v172_v63, %v141_v43  ;;  %v1697_v35 = vld [vmem:[%s1968_s5 + $0xc] sm:$0x3]  ;;  %v1713_v43 = vld [vmem:[%s1968_s5 + $0x18] sm:$0x3] }
 0x100   :  { %v213_v31 = vsel %vm191_vm2, %v182_v22, 0.0  ;;  %v222_v32 = vsel %vm191_vm2, %v185_v24, 0.0  ;;  %v225_v38 = vsel %vm191_vm2, %v186_v33, 0.0  ;;  %v216_v39 = vsel %vm191_vm2, %v183_v34, 0.0  ;;  %v1674_v24 = vld [vmem:[%s1968_s5] sm:$0x3] }
 0x101   :  { %202 = vadd.xlane.f32.xlu1 %v201_v0  ;;  %196 = vadd.xlane.f32.xlu0 %v195_v4  ;;  %v231_v47 = vsel %vm191_vm2, %v188_v40, 0.0  ;;  %v228_v48 = vsel %vm191_vm2, %v187_v41, 0.0  ;;  %v189_v50 = vmul.f32 %v172_v63, %v140_v44  ;;  %v539_v51 = vmul.f32 %v1592_v45, %v1597_v46  ;;  %v1635_v4 = vld [vmem:[%s1968_s5 + $0x12] sm:$0x3] }
 0x102   :  { %v237_v53 = vsel %vm191_vm2, %v190_v49, 0.0  ;;  %v540_v56 = vmul.f32 %v1592_v45, %v1606_v52  ;;  %v495_v58 = vcombine.high %v1283_v29, %v1283_v29  ;;  %v541_v60 = vmul.f32 %v1592_v45, %v1616_v57 }
 0x103   :  { %v234_v54 = vsel %vm191_vm2, %v189_v50, 0.0  ;;  %v558_v55 = vsel %vm554_vm3, %v539_v51, 0.0  ;;  %v543_v0 = vmul.f32 %v1592_v45, %v1624_v61  ;;  %v1431_v14 = vmov 0   ;;  %v1721_v50 = vpop.permute.xlu0 %347 }
 0x104   :  { %v561_v59 = vsel %vm554_vm3, %v540_v56, 0.0  ;;  %v1627_v62 = vrot.slane %v495_v58, %v1565_v42  ;;  %v564_v63 = vsel %vm554_vm3, %v541_v60, 0.0  ;;  %v450_v42 = vrot.slane %v1532_v23, %v1546_v30  ;;  %v1657_v23 = vld [vmem:[%s1968_s5 + $0x16] sm:$0x3]  ;;  %1330 = vset.pattern.permute.xlu0 %v1431_v14  ;;  %1331 = vset.pattern.permute.xlu1 %v1431_v14 }
 0x105   :  { %208 = vadd.xlane.f32.xlu1 %v207_v11  ;;  %205 = vadd.xlane.f32.xlu0 %v204_v12  ;;  %v570_v6 = vsel %vm554_vm3, %v543_v0, 0.0  ;;  %v538_v26 = vmul.f32 %v1592_v45, %v1674_v24 }
 0x106   :  { %v1639_v5 = vrot.slane %v1627_v62, %v1505_v8 }
 0x107   :  { %v555_v29 = vsel %vm554_vm3, %v538_v26, 0.0 }
 0x108   :  { %v547_v9 = vmul.f32 %v1639_v5, %v1635_v4  ;;  %v548_v12 = vmul.f32 %v1639_v5, %v1649_v10  ;;  %v549_v17 = vmul.f32 %v1639_v5, %v1657_v23 }
 0x109   :  { %211 = vadd.xlane.f32.xlu0 %v210_v19  ;;  %220 = vadd.xlane.f32.xlu1 %v219_v21  ;;  %v551_v21 = vmul.f32 %v1639_v5, %v1665_v18 }
 0x10a   :  { %v582_v11 = vsel %vm554_vm3, %v547_v9, 0.0  ;;  %v585_v16 = vsel %vm554_vm3, %v548_v12, 0.0  ;;  %v588_v19 = vsel %vm554_vm3, %v549_v17, 0.0 }
 0x10b   :  { %v594_v22 = vsel %vm554_vm3, %v551_v21, 0.0 }
 0x10d   :  { %214 = vadd.xlane.f32.xlu0 %v213_v31  ;;  %223 = vadd.xlane.f32.xlu1 %v222_v32  ;;  %v542_v31 = vmul.f32 %v1592_v45, %v1681_v28  ;;  %v1689_v32 = vld [vmem:[%s1968_s5 + $0x10] sm:$0x3] }
 0x10e   :  { %v546_v34 = vmul.f32 %v1639_v5, %v1689_v32 }
 0x10f   :  { %v567_v33 = vsel %vm554_vm3, %v542_v31, 0.0 }
 0x110   :  { %v579_v36 = vsel %vm554_vm3, %v546_v34, 0.0 }
 0x111   :  { %226 = vadd.xlane.f32.xlu1 %v225_v38  ;;  %217 = vadd.xlane.f32.xlu0 %v216_v39  ;;  %v544_v38 = vmul.f32 %v1592_v45, %v1697_v35  ;;  %v1705_v39 = vld [vmem:[%s1968_s5 + $0xe] sm:$0x3] }
 0x112   :  { %v545_v41 = vmul.f32 %v1592_v45, %v1705_v39 }
 0x113   :  { %v573_v40 = vsel %vm554_vm3, %v544_v38, 0.0 }
 0x114   :  { %v576_v44 = vsel %vm554_vm3, %v545_v41, 0.0 }
 0x115   :  { %232 = vadd.xlane.f32.xlu1 %v231_v47  ;;  %229 = vadd.xlane.f32.xlu0 %v228_v48  ;;  %v550_v47 = vmul.f32 %v1639_v5, %v1713_v43  ;;  %v1718_v48 = vpop.permute.xlu1 %354 }
 0x117   :  { %v591_v49 = vsel %vm554_vm3, %v550_v47, 0.0 }
 0x119   :  { %238 = vadd.xlane.f32.xlu1 %v237_v53  ;;  %235 = vadd.xlane.f32.xlu0 %v234_v54  ;;  %v1723_v51 = vpop.permute.xlu1 %361  ;;  %v1725_v53 = vpop.permute.xlu0 %375 }
 0x11d   :  { %559 = vadd.xlane.f32.xlu0 %v558_v55  ;;  %v1727_v54 = vpop.permute.xlu1 %368  ;;  %v1729_v55 = vpop.permute.xlu0 %403 }
 0x121   :  { %562 = vadd.xlane.f32.xlu0 %v561_v59  ;;  %v1731_v56 = vpop.permute.xlu1 %382  ;;  %v1733_v58 = vpop.permute.xlu0 %389 }
 0x125   :  { %565 = vadd.xlane.f32.xlu0 %v564_v63  ;;  %v1735_v59 = vpop.permute.xlu1 %410  ;;  %v1737_v60 = vpop.permute.xlu0 %396 }
 0x129   :  { %571 = vadd.xlane.f32.xlu0 %v570_v6  ;;  %v1739_v63 = vpop.permute.xlu1 %417  ;;  %v1741_v0 = vpop.permute.xlu0 %431 }
 0x12a   :  { %452 = vbcast.lane.b32.xlu1 %v450_v42, 256 }
 0x12d   :  { %583 = vadd.xlane.f32.xlu0 %v582_v11  ;;  %v1743_v42 = vpop.permute.xlu1 %424  ;;  %v1745_v6 = vpop.permute.xlu0 %445 }
 0x131   :  { %586 = vadd.xlane.f32.xlu0 %v585_v16  ;;  %v1747_v9 = vpop.permute.xlu1 %438 }
 0x135   :  { %589 = vadd.xlane.f32.xlu0 %v588_v19 }
 0x139   :  { %595 = vadd.xlane.f32.xlu0 %v594_v22 }
 0x14e   :  { %556 = vadd.xlane.f32.xlu1 %v555_v29 }
 0x152   :  { %568 = vadd.xlane.f32.xlu1 %v567_v33 }
 0x156   :  { %580 = vadd.xlane.f32.xlu1 %v579_v36 }
 0x15a   :  { %574 = vadd.xlane.f32.xlu1 %v573_v40 }
 0x15e   :  { %577 = vadd.xlane.f32.xlu1 %v576_v44 }
 0x162   :  { %592 = vadd.xlane.f32.xlu1 %v591_v49 }
 0x18a   :  { %v200_v11 = vpop.xlane.xlu1 %199  ;;  %v194_v12 = vpop.xlane.xlu0 %193 }
 0x18b   :  { %v242_v14 = vsub.f32 0.0, %v200_v11  ;;  %v240_v16 = vsub.f32 0.0, %v194_v12 }
 0x18d   :  { %v260_v17 = vmul.f32 1.442695, %v242_v14  ;;  %v256_v19 = vmul.f32 1.442695, %v240_v16 }
 0x18e   :  { %v203_v21 = vpop.xlane.xlu1 %202  ;;  %v197_v22 = vpop.xlane.xlu0 %196 }
 0x18f   :  { %1332 = vpow2.f32 %v260_v17  ;;  %v243_v26 = vsub.f32 0.0, %v203_v21  ;;  %v241_v29 = vsub.f32 0.0, %v197_v22 }
 0x190   :  { %1334 = vpow2.f32 %v256_v19 }
 0x191   :  { %v262_v31 = vmul.f32 1.442695, %v243_v26  ;;  %v258_v33 = vmul.f32 1.442695, %v241_v29 }
 0x192   :  { %v209_v34 = vpop.xlane.xlu1 %208  ;;  %v206_v36 = vpop.xlane.xlu0 %205 }
 0x193   :  { %1336 = vpow2.f32 %v262_v31  ;;  %v245_v38 = vsub.f32 0.0, %v209_v34  ;;  %v244_v40 = vsub.f32 0.0, %v206_v36 }
 0x194   :  { %1338 = vpow2.f32 %v258_v33 }
 0x195   :  { %v266_v41 = vmul.f32 1.442695, %v245_v38  ;;  %v264_v44 = vmul.f32 1.442695, %v244_v40 }
 0x196   :  { %v212_v47 = vpop.xlane.xlu0 %211  ;;  %v221_v49 = vpop.xlane.xlu1 %220 }
 0x197   :  { %1340 = vpow2.f32 %v266_v41  ;;  %v246_v11 = vsub.f32 0.0, %v212_v47  ;;  %v249_v12 = vsub.f32 0.0, %v221_v49 }
 0x198   :  { %1342 = vpow2.f32 %v264_v44 }
 0x199   :  { %v1333_v14 = vpop.eup %1332  ;;  %v268_v16 = vmul.f32 1.442695, %v246_v11  ;;  %v274_v21 = vmul.f32 1.442695, %v249_v12 }
 0x19a   :  { %v1335_v17 = vpop.eup %1334  ;;  %v290_v19 = vadd.f32 1.0, %v1333_v14  ;;  %v215_v22 = vpop.xlane.xlu0 %214 }
 0x19b   :  { %v224_v26 = vpop.xlane.xlu1 %223  ;;  %v288_v29 = vadd.f32 1.0, %v1335_v17  ;;  %1344 = vpow2.f32 %v268_v16  ;;  %v247_v31 = vsub.f32 0.0, %v215_v22 }
 0x19c   :  { %v250_v34 = vsub.f32 0.0, %v224_v26  ;;  %1346 = vrcp.f32 %v290_v19 }
 0x19d   :  { %v1337_v33 = vpop.eup %1336  ;;  %1348 = vrcp.f32 %v288_v29  ;;  %v270_v36 = vmul.f32 1.442695, %v247_v31 }
 0x19e   :  { %v1339_v38 = vpop.eup %1338  ;;  %v291_v40 = vadd.f32 1.0, %v1337_v33  ;;  %1350 = vpow2.f32 %v274_v21  ;;  %v276_v41 = vmul.f32 1.442695, %v250_v34  ;;  %v218_v47 = vpop.xlane.xlu0 %217 }
 0x19f   :  { %v227_v44 = vpop.xlane.xlu1 %226  ;;  %v289_v49 = vadd.f32 1.0, %v1339_v38  ;;  %1352 = vpow2.f32 %v270_v36  ;;  %v248_v12 = vsub.f32 0.0, %v218_v47 }
 0x1a0   :  { %v251_v11 = vsub.f32 0.0, %v227_v44  ;;  %1354 = vrcp.f32 %v291_v40 }
 0x1a1   :  { %v1341_v14 = vpop.eup %1340  ;;  %1356 = vrcp.f32 %v289_v49  ;;  %v272_v19 = vmul.f32 1.442695, %v248_v12 }
 0x1a2   :  { %v278_v16 = vmul.f32 1.442695, %v251_v11  ;;  %v1343_v17 = vpop.eup %1342  ;;  %v293_v22 = vadd.f32 1.0, %v1341_v14  ;;  %1358 = vpow2.f32 %v276_v41  ;;  %v230_v29 = vpop.xlane.xlu0 %229 }
 0x1a3   :  { %v233_v26 = vpop.xlane.xlu1 %232  ;;  %v292_v31 = vadd.f32 1.0, %v1343_v17  ;;  %v252_v34 = vsub.f32 0.0, %v230_v29 }
 0x1a4   :  { %1360 = vpow2.f32 %v278_v16  ;;  %v253_v21 = vsub.f32 0.0, %v233_v26 }
 0x1a5   :  { %1362 = vrcp.f32 %v293_v22  ;;  %v1345_v33 = vpop.eup %1344  ;;  %v280_v38 = vmul.f32 1.442695, %v252_v34 }
 0x1a6   :  { %1364 = vrcp.f32 %v292_v31  ;;  %v282_v36 = vmul.f32 1.442695, %v253_v21  ;;  %v1347_v44 = vpop.eup %1346  ;;  %v294_v40 = vadd.f32 1.0, %v1345_v33  ;;  %v236_v49 = vpop.xlane.xlu0 %235 }
 0x1a7   :  { %1366 = vpow2.f32 %v272_v19  ;;  %v239_v47 = vpop.xlane.xlu1 %238  ;;  %v1349_v11 = vpop.eup %1348  ;;  %v254_v12 = vsub.f32 0.0, %v236_v49 }
 0x1a8   :  { %1368 = vpow2.f32 %v282_v36  ;;  %v255_v41 = vsub.f32 0.0, %v239_v47  ;;  %v1351_v14 = vpop.eup %1350  ;;  %v470_v17 = vmul.f32 %v1349_v11, %v1721_v50 }
 0x1a9   :  { %v1353_v16 = vpop.eup %1352  ;;  %v297_v26 = vadd.f32 1.0, %v1351_v14  ;;  %1370 = vpow2.f32 %v280_v38  ;;  %v284_v21 = vmul.f32 1.442695, %v254_v12 }
 0x1aa   :  { %v286_v22 = vmul.f32 1.442695, %v255_v41  ;;  %v1355_v29 = vpop.eup %1354  ;;  %1372 = vrcp.f32 %v294_v40  ;;  %v295_v31 = vadd.f32 1.0, %v1353_v16  ;;  %612 = vperm.xlu0 %1330, %v470_v17  }
 0x1ab   :  { %v1357_v34 = vpop.eup %1356  ;;  %1374 = vrcp.f32 %v297_v26  ;;  %v473_v19 = vmul.f32 %v1355_v29, %v1727_v54  ;;  %v472_v54 = vmul.f32 %v1347_v44, %v1723_v51 }
 0x1ac   :  { %v1359_v33 = vpop.eup %1358  ;;  %1376 = vrcp.f32 %v295_v31  ;;  %v471_v36 = vmul.f32 %v1357_v34, %v1718_v48 }
 0x1ad   :  { %v298_v49 = vadd.f32 1.0, %v1359_v33  ;;  %1378 = vpow2.f32 %v286_v22 }
 0x1ae   :  { %v1361_v47 = vpop.eup %1360  ;;  %1380 = vpow2.f32 %v284_v21  ;;  %615 = vperm.xlu1 %1331, %v471_v36   ;;  %621 = vperm.xlu0 %1330, %v473_v19  }
 0x1af   :  { %v1363_v50 = vpop.eup %1362  ;;  %v299_v11 = vadd.f32 1.0, %v1361_v47  ;;  %1382 = vrcp.f32 %v298_v49 }
 0x1b0   :  { %v1365_v38 = vpop.eup %1364  ;;  %v475_v40 = vmul.f32 %v1363_v50, %v1731_v56 }
 0x1b1   :  { %v1367_v41 = vpop.eup %1366  ;;  %1384 = vrcp.f32 %v299_v11  ;;  %v474_v22 = vmul.f32 %v1365_v38, %v1725_v53  ;;  %v560_v11 = vpop.xlane.xlu0 %559 }
 0x1b2   :  { %v1369_v12 = vpop.eup %1368  ;;  %v296_v14 = vadd.f32 1.0, %v1367_v41  ;;  %618 = vperm.xlu1 %1331, %v472_v54   ;;  %627 = vperm.xlu0 %1330, %v475_v40   ;;  %v453_v41 = vpop.permute.xlu1 %452 }
 0x1b3   :  { %v301_v17 = vadd.f32 1.0, %v1369_v12  ;;  %v1371_v48 = vpop.eup %1370 }
 0x1b4   :  { %1386 = vrcp.f32 %v296_v14  ;;  %v1373_v16 = vpop.eup %1372  ;;  %v300_v26 = vadd.f32 1.0, %v1371_v48 }
 0x1b5   :  { %1388 = vrcp.f32 %v301_v17  ;;  %v1375_v29 = vpop.eup %1374  ;;  %v476_v34 = vmul.f32 %v1373_v16, %v1733_v58  ;;  %v563_v14 = vpop.xlane.xlu0 %562 }
 0x1b6   :  { %v1377_v31 = vpop.eup %1376  ;;  %624 = vperm.xlu1 %1331, %v474_v22   ;;  %v479_v56 = vmul.f32 %v1375_v29, %v1735_v59  ;;  %1390 = vrcp.f32 %v300_v26 }
 0x1b7   :  { %v1379_v21 = vpop.eup %1378  ;;  %v477_v53 = vmul.f32 %v1377_v31, %v1737_v60 }
 0x1b8   :  { %v1381_v51 = vpop.eup %1380  ;;  %v303_v44 = vadd.f32 1.0, %v1379_v21  ;;  %850 = vperm.xlu0 %1330, %v479_v56  }
 0x1b9   :  { %v1383_v19 = vpop.eup %1382  ;;  %v302_v33 = vadd.f32 1.0, %v1381_v51  ;;  %v566_v17 = vpop.xlane.xlu0 %565 }
 0x1ba   :  { %1392 = vrcp.f32 %v303_v44  ;;  %630 = vperm.xlu1 %1331, %v476_v34   ;;  %v480_v47 = vmul.f32 %v1383_v19, %v1739_v63 }
 0x1bb   :  { %v1385_v36 = vpop.eup %1384  ;;  %1394 = vrcp.f32 %v302_v33 }
 0x1bc   :  { %853 = vperm.xlu0 %1330, %v480_v47   ;;  %v481_v59 = vmul.f32 %v1385_v36, %v1743_v42 }
 0x1bd   :  { %v572_v48 = vpop.xlane.xlu0 %571 }
 0x1be   :  { %v1387_v49 = vpop.eup %1386  ;;  %633 = vperm.xlu1 %1331, %v477_v53   ;;  %v1788_v53 = vld [vmem:[%s1968_s5 + $0x1c] sm:$0x3] }
 0x1bf   :  { %v1389_v50 = vpop.eup %1388  ;;  %v478_v38 = vmul.f32 %v1387_v49, %v1729_v55 }
 0x1c0   :  { %856 = vperm.xlu0 %1330, %v481_v59   ;;  %v483_v58 = vmul.f32 %v1389_v50, %v1747_v9  ;;  %v1391_v40 = vpop.eup %1390  ;;  %v636_v9 = vand.u32 127, %v146_v2 }
 0x1c1   :  { %v482_v63 = vmul.f32 %v1391_v40, %v1741_v0  ;;  %v584_v16 = vpop.xlane.xlu0 %583  ;;  %v552_v40 = vmul.f32 %v1639_v5, %v1788_v53 }
 0x1c2   :  { %847 = vperm.xlu1 %1331, %v478_v38   ;;  %v1766_v55 = vsub.s32 %v636_v9, %v1490_v3 }
 0x1c4   :  { %v1393_v54 = vpop.eup %1392  ;;  %862 = vperm.xlu0 %1330, %v483_v58   ;;  %v731_v26 = vrot.slane %v560_v11, %v1766_v55  ;;  %v735_v0 = vrot.slane %v563_v14, %v1766_v55  ;;  %v739_v3 = vrot.slane %v566_v17, %v1766_v55  ;;  %v957_v19 = vrot.slane %v584_v16, %v1766_v55 }
 0x1c5   :  { %v1395_v12 = vpop.eup %1394  ;;  %v485_v60 = vmul.f32 %v1393_v54, %v453_v41  ;;  %v587_v31 = vpop.xlane.xlu0 %586  ;;  %v747_v50 = vrot.slane %v572_v48, %v1766_v55  ;;  %v597_v14 = vsel %vm554_vm3, %v552_v40, 0.0 }
 0x1c6   :  { %859 = vperm.xlu1 %1331, %v482_v63   ;;  %v484_v42 = vmul.f32 %v1395_v12, %v1745_v6  ;;  %v1774_v6 = vld [vmem:[%s1968_s5 + $0x1e] sm:$0x3]  ;;  %v961_v36 = vrot.slane %v587_v31, %v1766_v55 }
 0x1c7   :  { %v553_v51 = vmul.f32 %v1639_v5, %v1774_v6 }
 0x1c8   :  { %868 = vperm.xlu0 %1330, %v485_v60  }
 0x1c9   :  { %v590_v47 = vpop.xlane.xlu0 %589  ;;  %v600_v59 = vsel %vm554_vm3, %v553_v51, 0.0 }
 0x1ca   :  { %865 = vperm.xlu1 %1331, %v484_v42   ;;  %v965_v11 = vrot.slane %v590_v47, %v1766_v55 }
 0x1db   :  { %v557_v22 = vpop.xlane.xlu1 %556 }
 0x1dc   :  { %v727_v29 = vrot.slane %v557_v22, %v1766_v55 }
 0x1de   :  { %v756_v2 = vsel %vm669_vm4, %v731_v26, %v727_v29 }
 0x1df   :  { %v569_v56 = vpop.xlane.xlu1 %568  ;;  %v757_v21 = vsel %vm671_vm5, %v735_v0, %v756_v2  ;;  %v596_v0 = vpop.xlane.xlu0 %595 }
 0x1e0   :  { %v743_v44 = vrot.slane %v569_v56, %v1766_v55  ;;  %v758_v34 = vsel %vm673_vm6, %v739_v3, %v757_v21 }
 0x1e2   :  { %v759_v58 = vsel %vm675_vm7, %v743_v44, %v758_v34 }
 0x1e3   :  { %v581_v33 = vpop.xlane.xlu1 %580  ;;  %v760_v12 = vsel %vm677_vm8, %v747_v50, %v759_v58 }
 0x1e4   :  { %v953_v49 = vrot.slane %v581_v33, %v1766_v55 }
 0x1e6   :  { %v982_v38 = vsel %vm669_vm4, %v957_v19, %v953_v49 }
 0x1e7   :  { %601 = vadd.xlane.f32.xlu0 %v600_v59  ;;  %v575_v41 = vpop.xlane.xlu1 %574  ;;  %v983_v54 = vsel %vm671_vm5, %v961_v36, %v982_v38 }
 0x1e8   :  { %v751_v63 = vrot.slane %v575_v41, %v1766_v55  ;;  %v984_v60 = vsel %vm673_vm6, %v965_v11, %v983_v54 }
 0x1ea   :  { %v761_v17 = vsel %vm679_vm9, %v751_v63, %v760_v12 }
 0x1eb   :  { %v578_v42 = vpop.xlane.xlu1 %577 }
 0x1ec   :  { %v755_v48 = vrot.slane %v578_v42, %v1766_v55 }
 0x1ee   :  { %598 = vadd.xlane.f32.xlu1 %v597_v14  ;;  %v762_v9 = vsel %vm681_vm10, %v755_v48, %v761_v17 }
 0x1ef   :  { %1307 = vmatpush3.msra.mxu1 %v762_v9  ;;  %v593_v16 = vpop.xlane.xlu1 %592 }
 0x1f0   :  { %v969_v26 = vrot.slane %v593_v16, %v1766_v55  ;;  %1311 = vmatprep.subr.mxu1 %v1429_v1 }
 0x1f2   :  { %v985_v22 = vsel %vm675_vm7, %v969_v26, %v984_v60 }
 0x229   :  { %v613_v29 = vpop.permute.xlu0 %612 }
 0x22a   :  { %v640_v44 = vrot.slane %v613_v29, %v1766_v55 }
 0x22d   :  { %v616_v31 = vpop.permute.xlu1 %615  ;;  %v622_v2 = vpop.permute.xlu0 %621 }
 0x22e   :  { %v644_v21 = vrot.slane %v616_v31, %v1766_v55  ;;  %v652_v59 = vrot.slane %v622_v2, %v1766_v55 }
 0x230   :  { %v670_v19 = vsel %vm669_vm4, %v644_v21, %v640_v44 }
 0x231   :  { %v619_v3 = vpop.permute.xlu1 %618  ;;  %v628_v56 = vpop.permute.xlu0 %627 }
 0x232   :  { %v648_v51 = vrot.slane %v619_v3, %v1766_v55  ;;  %v660_v40 = vrot.slane %v628_v56, %v1766_v55 }
 0x234   :  { %v672_v33 = vsel %vm671_vm5, %v648_v51, %v670_v19 }
 0x235   :  { %v625_v34 = vpop.permute.xlu1 %624  ;;  %v674_v50 = vsel %vm673_vm6, %v652_v59, %v672_v33 }
 0x236   :  { %v656_v36 = vrot.slane %v625_v34, %v1766_v55 }
 0x237   :  { %v851_v47 = vpop.permute.xlu0 %850 }
 0x238   :  { %v676_v11 = vsel %vm675_vm7, %v656_v36, %v674_v50  ;;  %v877_v17 = vrot.slane %v851_v47, %v1766_v55  ;;  %v973_v50 = vrot.slane %v596_v0, %v1766_v55 }
 0x239   :  { %v631_v49 = vpop.permute.xlu1 %630  ;;  %v678_v63 = vsel %vm677_vm8, %v660_v40, %v676_v11 }
 0x23a   :  { %v664_v58 = vrot.slane %v631_v49, %v1766_v55 }
 0x23b   :  { %v854_v38 = vpop.permute.xlu0 %853 }
 0x23c   :  { %v680_v60 = vsel %vm679_vm9, %v664_v58, %v678_v63  ;;  %v881_v9 = vrot.slane %v854_v38, %v1766_v55  ;;  %v986_v38 = vsel %vm677_vm8, %v973_v50, %v985_v22 }
 0x23d   :  { %v634_v41 = vpop.permute.xlu1 %633 }
 0x23e   :  { %v668_v54 = vrot.slane %v634_v41, %v1766_v55 }
 0x23f   :  { %v857_v12 = vpop.permute.xlu0 %856 }
 0x240   :  { %v682_v14 = vsel %vm681_vm10, %v668_v54, %v680_v60  ;;  %v885_v26 = vrot.slane %v857_v12, %v1766_v55 }
 0x241   :  { %v848_v42 = vpop.permute.xlu1 %847  ;;  %684 = vxpose.xlu1.b32.start.end [1/1] (short) (narrow) %v682_v14, 8 }
 0x242   :  { %v873_v48 = vrot.slane %v848_v42, %v1766_v55 }
 0x243   :  { %v863_v16 = vpop.permute.xlu0 %862 }
 0x244   :  { %v902_v29 = vsel %vm669_vm4, %v877_v17, %v873_v48  ;;  %v893_v44 = vrot.slane %v863_v16, %v1766_v55 }
 0x245   :  { %v903_v31 = vsel %vm671_vm5, %v881_v9, %v902_v29  ;;  %v860_v2 = vpop.permute.xlu1 %859 }
 0x246   :  { %v889_v3 = vrot.slane %v860_v2, %v1766_v55  ;;  %v904_v56 = vsel %vm673_vm6, %v885_v26, %v903_v31 }
 0x247   :  { %v869_v51 = vpop.permute.xlu0 %868 }
 0x248   :  { %v905_v21 = vsel %vm675_vm7, %v889_v3, %v904_v56  ;;  %v901_v33 = vrot.slane %v869_v51, %v1766_v55 }
 0x249   :  { %v866_v34 = vpop.permute.xlu1 %865  ;;  %v906_v36 = vsel %vm677_vm8, %v893_v44, %v905_v21 }
 0x24a   :  { %v897_v19 = vrot.slane %v866_v34, %v1766_v55 }
 0x24c   :  { %v907_v47 = vsel %vm679_vm9, %v897_v19, %v906_v36 }
 0x24d   :  { %v908_v59 = vsel %vm681_vm10, %v901_v33, %v907_v47 }
 0x24e   :  { %910 = vxpose.xlu0.b32.start.end [1/1] (short) (narrow) %v908_v59, 8 }
 0x274   :  { %v602_v58 = vpop.xlane.xlu0 %601 }
 0x275   :  { %v981_v40 = vrot.slane %v602_v58, %v1766_v55 }
 0x27b   :  { %v599_v49 = vpop.xlane.xlu1 %598 }
 0x27c   :  { %v977_v11 = vrot.slane %v599_v49, %v1766_v55 }
 0x27e   :  { %v987_v41 = vsel %vm679_vm9, %v977_v11, %v986_v38 }
 0x27f   :  { %v988_v63 = vsel %vm681_vm10, %v981_v40, %v987_v41 }
 0x2c1   :  { %v700_v54 = vpop.trf.xlu1 }
 0x2c2   :  { %1309 = vmatmul.mubr.msk.f32.vlgmr.msra.gmra.mrb[0].mxu1 %vm764_vm11, %v700_v54 }
 0x2c3   :  { %1312 = vmatpush3.msra.mxu1 %v988_v63  ;;  %1313 = vmatprep.mubr.msk.f32.mxu1 %vm1428_vm0, %v1429_v1 }
 0x2ce   :  { %v926_v12 = vpop.trf.xlu0 }
 0x2cf   :  { %1314 = vmatmul.mubr.msk.f32.vlgmr.msra.gmra.mrb[2].mxu1 %vm764_vm11, %v926_v12 }
 0x395   :  { %v834_v0 = vpop.f32.mrb[0].mxu1 }
 0x396   :  { %v1064_v60 = vsel %vm1063_vm12, %v834_v0, -inf  ;;  %v1310_v14 = vpop.f32.mrb[1].mxu1 }
 0x397   :  { %v1065_v22 = vrot.slane %v1064_v60, 4 }
 0x399   :  { %v1066_v42 = vmax.f32 %v1064_v60, %v1065_v22 }
 0x39b   :  { %v1067_v55 = vrot.slane %v1066_v42, 2 }
 0x39d   :  { %v1068_v17 = vmax.f32 %v1066_v42, %v1067_v55 }
 0x39f   :  { %v1069_v48 = vrot.slane %v1068_v17, 1 }
 0x3a1   :  { %v1070_v9 = vmax.f32 %v1068_v17, %v1069_v48 }
 0x3a2   :  { %v1059_v16 = vpop.f32.mrb[2].mxu1 }
 0x3a3   :  { %vm1078_vm13 = vcmp.le.f32.partialorder %v1070_v9, 1.0  ;;  %v1071_v26 = vsel %vm1063_vm12, %v1059_v16, -inf  ;;  %v1315_v29 = vpop.f32.mrb[3].mxu1 }
 0x3a4   :  { %v1080_v31 = vsel %vm1078_vm13, 1.0, %v1070_v9  ;;  %v1072_v2 = vrot.slane %v1071_v26, 4 }
 0x3a5   :  { %1396 = vrcp.f32 %v1080_v31 }
 0x3a6   :  { %v1073_v1 = vmax.f32 %v1071_v26, %v1072_v2 }
 0x3a8   :  { %v1074_v3 = vrot.slane %v1073_v1, 2 }
 0x3aa   :  { %v1075_v56 = vmax.f32 %v1073_v1, %v1074_v3 }
 0x3ac   :  { %v1076_v21 = vrot.slane %v1075_v56, 1 }
 0x3ae   :  { %v1077_v51 = vmax.f32 %v1075_v56, %v1076_v21 }
 0x3af   :  { %v1397_v44 = vpop.eup %1396 }
 0x3b0   :  { %v1083_v34 = vmul.f32 %v1397_v44, %v834_v0  ;;  %vm1079_vm14 = vcmp.le.f32.partialorder %v1077_v51, 1.0 }
 0x3b1   :  { %v1081_v19 = vsel %vm1079_vm14, 1.0, %v1077_v51 }
 0x3b2   :  { %1398 = vrcp.f32 %v1081_v19  ;;  %v1096_v33 = vrot.slane %v1083_v34, %v1502_v7  ;;  %v1089_v36 = vrot.slane %v1083_v34, %v1505_v8  ;;  %v1103_v47 = vrot.slane %v1083_v34, %v1514_v13 }
 0x3b3   :  { %v1124_v59 = vrot.slane %v1083_v34, %v1536_v25  ;;  %v1110_v49 = vrot.slane %v1083_v34, %v1526_v20  ;;  %v1138_v50 = vrot.slane %v1083_v34, %v1546_v30  ;;  %v1117_v38 = vrot.slane %v1083_v34, %v1517_v15 }
 0x3b4   :  { %1098 = vbcast.lane.b32.xlu1 %v1096_v33, 256  ;;  %1091 = vbcast.lane.b32.xlu0 %v1089_v36, 256  ;;  %v1131_v41 = vrot.slane %v1083_v34, %v1541_v27 }
 0x3b8   :  { %1105 = vbcast.lane.b32.xlu1 %v1103_v47, 256  ;;  %1126 = vbcast.lane.b32.xlu0 %v1124_v59, 256 }
 0x3bc   :  { %v1399_v11 = vpop.eup %1398  ;;  %1112 = vbcast.lane.b32.xlu1 %v1110_v49, 256  ;;  %1140 = vbcast.lane.b32.xlu0 %v1138_v50, 256 }
 0x3bd   :  { %v1085_v58 = vmul.f32 %v1399_v11, %v1059_v16 }
 0x3bf   :  { %v1152_v40 = vrot.slane %v1085_v58, %v1502_v7  ;;  %v1166_v54 = vrot.slane %v1085_v58, %v1526_v20  ;;  %v1145_v63 = vrot.slane %v1085_v58, %v1505_v8  ;;  %v1180_v12 = vrot.slane %v1085_v58, %v1536_v25 }
 0x3c0   :  { %1119 = vbcast.lane.b32.xlu1 %v1117_v38, 256  ;;  %v1159_v0 = vrot.slane %v1085_v58, %v1514_v13  ;;  %v1194_v60 = vrot.slane %v1085_v58, %v1546_v30  ;;  %v1173_v7 = vrot.slane %v1085_v58, %v1517_v15  ;;  %v1187_v14 = vrot.slane %v1085_v58, %v1541_v27 }
 0x3c1   :  { %1154 = vbcast.lane.b32.xlu0 %v1152_v40, 256  ;;  %v1214_v20 = vsub.f32 1.0, %v1586_v37  ;;  %v1215_v37 = vsub.f32 1.0, %v1627_v62 }
 0x3c3   :  { %v1221_v22 = vrot.slane %v1214_v20, %v1505_v8  ;;  %v1225_v31 = vrot.slane %v1215_v37, %v1505_v8 }
 0x3c4   :  { %1133 = vbcast.lane.b32.xlu1 %v1131_v41, 256 }
 0x3c5   :  { %1168 = vbcast.lane.b32.xlu0 %v1166_v54, 256  ;;  %v1229_v25 = vmul.f32 %v1221_v22, %v1597_v46  ;;  %v1228_v42 = vmul.f32 %v1221_v22, %v1674_v24  ;;  %v1230_v9 = vmul.f32 %v1221_v22, %v1606_v52  ;;  %v1233_v27 = vmul.f32 %v1221_v22, %v1624_v61 }
 0x3c6   :  { %v1231_v62 = vmul.f32 %v1221_v22, %v1616_v57  ;;  %v1235_v29 = vmul.f32 %v1221_v22, %v1705_v39  ;;  %v1232_v8 = vmul.f32 %v1221_v22, %v1681_v28  ;;  %v1237_v51 = vmul.f32 %v1225_v31, %v1635_v4 }
 0x3c7   :  { %v1234_v28 = vmul.f32 %v1221_v22, %v1697_v35  ;;  %v1239_v47 = vmul.f32 %v1225_v31, %v1657_v23  ;;  %v1236_v11 = vmul.f32 %v1225_v31, %v1689_v32  ;;  %v1241_v38 = vmul.f32 %v1225_v31, %v1665_v18 }
 0x3c8   :  { %1147 = vbcast.lane.b32.xlu1 %v1145_v63, 256  ;;  %v1238_v54 = vmul.f32 %v1225_v31, %v1649_v10 }
 0x3c9   :  { %1182 = vbcast.lane.b32.xlu0 %v1180_v12, 256  ;;  %v1243_v12 = vmul.f32 %v1225_v31, %v1774_v6 }
 0x3cc   :  { %1161 = vbcast.lane.b32.xlu1 %v1159_v0, 256 }
 0x3cd   :  { %1196 = vbcast.lane.b32.xlu0 %v1194_v60, 256 }
 0x3d0   :  { %1175 = vbcast.lane.b32.xlu1 %v1173_v7, 256 }
 0x3d4   :  { %1189 = vbcast.lane.b32.xlu1 %v1187_v14, 256  ;;  %v1240_v14 = vmul.f32 %v1225_v31, %v1713_v43 }
 0x426   :  { %v1099_v55 = vpop.permute.xlu1 %1098  ;;  %v1092_v13 = vpop.permute.xlu0 %1091 }
 0x427   :  { %v1199_v30 = vmul.f32 %v1099_v55, %v1592_v45  ;;  %v1198_v17 = vmul.f32 %v1092_v13, %v1592_v45 }
 0x429   :  { %v1245_v48 = vadd.f32 %v1229_v25, %v1199_v30  ;;  %v1244_v15 = vadd.f32 %v1228_v42, %v1198_v17  ;;  %v1242_v42 = vmul.f32 %v1225_v31, %v1788_v53 }
 0x42a   :  { %v1106_v16 = vpop.permute.xlu1 %1105  ;;  %v1127_v26 = vpop.permute.xlu0 %1126 }
 0x42b   :  { %1261 = vst.msk [vmem:[%s1970_s7 + $0x2] sm:$0x3] %vm554_vm3, %v1245_v48  ;;  %1260 = vst.msk [vmem:[%s1970_s7] sm:$0x3] %vm554_vm3, %v1244_v15  ;;  %v1200_v46 = vmul.f32 %v1106_v16, %v1592_v45  ;;  %v1203_v52 = vmul.f32 %v1127_v26, %v1592_v45 }
 0x42d   :  { %v1246_v24 = vadd.f32 %v1230_v9, %v1200_v46  ;;  %v1249_v61 = vadd.f32 %v1233_v27, %v1203_v52 }
 0x42e   :  { %v1113_v2 = vpop.permute.xlu1 %1112  ;;  %v1141_v1 = vpop.permute.xlu0 %1140 }
 0x42f   :  { %1262 = vst.msk [vmem:[%s1970_s7 + $0x4] sm:$0x3] %vm554_vm3, %v1246_v24  ;;  %1265 = vst.msk [vmem:[%s1970_s7 + $0xa] sm:$0x3] %vm554_vm3, %v1249_v61  ;;  %v1201_v3 = vmul.f32 %v1113_v2, %v1592_v45  ;;  %v1205_v57 = vmul.f32 %v1141_v1, %v1592_v45 }
 0x431   :  { %v1247_v56 = vadd.f32 %v1231_v62, %v1201_v3  ;;  %v1251_v39 = vadd.f32 %v1235_v29, %v1205_v57 }
 0x432   :  { %v1120_v21 = vpop.permute.xlu1 %1119 }
 0x433   :  { %1263 = vst.msk [vmem:[%s1970_s7 + $0x6] sm:$0x3] %vm554_vm3, %v1247_v56  ;;  %1267 = vst.msk [vmem:[%s1970_s7 + $0xe] sm:$0x3] %vm554_vm3, %v1251_v39  ;;  %v1202_v44 = vmul.f32 %v1120_v21, %v1592_v45  ;;  %v1155_v34 = vpop.permute.xlu0 %1154 }
 0x434   :  { %v1207_v19 = vmul.f32 %v1155_v34, %v1639_v5 }
 0x435   :  { %v1248_v33 = vadd.f32 %v1232_v8, %v1202_v44 }
 0x436   :  { %v1253_v36 = vadd.f32 %v1237_v51, %v1207_v19  ;;  %v1134_v4 = vpop.permute.xlu1 %1133 }
 0x437   :  { %1264 = vst.msk [vmem:[%s1970_s7 + $0x8] sm:$0x3] %vm554_vm3, %v1248_v33  ;;  %v1204_v59 = vmul.f32 %v1134_v4, %v1592_v45  ;;  %v1169_v49 = vpop.permute.xlu0 %1168 }
 0x438   :  { %1269 = vst.msk [vmem:[%s1970_s7 + $0x12] sm:$0x3] %vm554_vm3, %v1253_v36  ;;  %v1209_v50 = vmul.f32 %v1169_v49, %v1639_v5 }
 0x439   :  { %v1250_v35 = vadd.f32 %v1234_v28, %v1204_v59 }
 0x43a   :  { %v1255_v58 = vadd.f32 %v1239_v47, %v1209_v50  ;;  %v1148_v23 = vpop.permute.xlu1 %1147 }
 0x43b   :  { %1266 = vst.msk [vmem:[%s1970_s7 + $0xc] sm:$0x3] %vm554_vm3, %v1250_v35  ;;  %v1206_v45 = vmul.f32 %v1148_v23, %v1639_v5  ;;  %v1183_v40 = vpop.permute.xlu0 %1182 }
 0x43c   :  { %1271 = vst.msk [vmem:[%s1970_s7 + $0x16] sm:$0x3] %vm554_vm3, %v1255_v58  ;;  %v1211_v41 = vmul.f32 %v1183_v40, %v1639_v5 }
 0x43d   :  { %v1252_v32 = vadd.f32 %v1236_v11, %v1206_v45 }
 0x43e   :  { %v1257_v63 = vadd.f32 %v1241_v38, %v1211_v41  ;;  %v1162_v18 = vpop.permute.xlu1 %1161 }
 0x43f   :  { %1268 = vst.msk [vmem:[%s1970_s7 + $0x10] sm:$0x3] %vm554_vm3, %v1252_v32  ;;  %v1208_v0 = vmul.f32 %v1162_v18, %v1639_v5  ;;  %v1197_v60 = vpop.permute.xlu0 %1196 }
 0x440   :  { %1273 = vst.msk [vmem:[%s1970_s7 + $0x1a] sm:$0x3] %vm554_vm3, %v1257_v63  ;;  %v1213_v7 = vmul.f32 %v1197_v60, %v1639_v5 }
 0x441   :  { %v1254_v10 = vadd.f32 %v1238_v54, %v1208_v0 }
 0x442   :  { %v1259_v20 = vadd.f32 %v1243_v12, %v1213_v7  ;;  %v1176_v6 = vpop.permute.xlu1 %1175 }
 0x443   :  { %1270 = vst.msk [vmem:[%s1970_s7 + $0x14] sm:$0x3] %vm554_vm3, %v1254_v10  ;;  %v1210_v22 = vmul.f32 %v1176_v6, %v1639_v5 }
 0x444   :  { %1275 = vst.msk [vmem:[%s1970_s7 + $0x1e] sm:$0x3] %vm554_vm3, %v1259_v20 }
 0x445   :  { %v1256_v25 = vadd.f32 %v1240_v14, %v1210_v22 }
 0x446   :  { %v1190_v55 = vpop.permute.xlu1 %1189 }
 0x447   :  { %1272 = vst.msk [vmem:[%s1970_s7 + $0x18] sm:$0x3] %vm554_vm3, %v1256_v25  ;;  %v1212_v43 = vmul.f32 %v1190_v55, %v1639_v5 }
 0x449   :  { %v1258_v13 = vadd.f32 %v1242_v42, %v1212_v43 }
 0x44b   :  { %1274 = vst.msk [vmem:[%s1970_s7 + $0x1c] sm:$0x3] %vm554_vm3, %v1258_v13 }
 0x44c   :  { %1280 = vsyncpa [#allocation3], 1 }

</bundles_post_ra>
